<compile_context>
chip_gen: v7x
topology: tpu7x:2x2x1
jax: 0.10.0
libtpu: 0.0.40
codegen_flags: <defaults>
</compile_context>

<pallas_src>
import math
from functools import partial

import jax
import jax.numpy as jnp
import numpy as np
from jax.experimental import pallas as pl
from jax.experimental.pallas import tpu as pltpu


def _equal_linear_kernel(x_ref, w_ref, b_ref, o_ref, acc_ref, *, scale, lr_mul):
    # grid = (M//tm, N//tn, K//tk); K (reduction) is the last, "arbitrary" axis.
    @pl.when(pl.program_id(2) == 0)
    def _init():
        acc_ref[...] = jnp.zeros_like(acc_ref)

    # x_ref: (tm, tk), w_ref: (tn, tk).  Contract over K on the MXU, i.e. x @ W^T,
    # without ever materializing the transposed weight.
    acc_ref[...] += jax.lax.dot_general(
        x_ref[...], w_ref[...],
        dimension_numbers=(((1,), (1,)), ((), ())),
        preferred_element_type=jnp.float32)

    @pl.when(pl.program_id(2) == pl.num_programs(2) - 1)
    def _finalize():
        out = acc_ref[...] * scale + b_ref[...] * lr_mul
        o_ref[...] = out.astype(o_ref.dtype)


def _round_up(x, m):
    return (x + m - 1) // m * m


def _pick_tile(dim, base, cap):
    """Padded extent (multiple of `base`) and a tile (<= cap) that divides it."""
    padded = _round_up(dim, base)
    t = min(cap, padded)
    while padded % t:
        t -= base
    return t, padded


def equal_linear(x, weight, bias=None, *, lr_mul=1.0, activation=None):
    """Pallas-TPU EqualLinear forward.  x: (..., in_dim), weight: (out_dim, in_dim)."""
    out_dim, in_dim = weight.shape
    scale = 1.0 / math.sqrt(in_dim) * lr_mul

    lead = x.shape[:-1]
    M = int(np.prod(lead)) if lead else 1
    K, N = in_dim, out_dim
    x2 = x.reshape(M, K)

    # Per the reference module: the activation branch calls F.linear without bias
    # (the spec code applies no activation function itself).
    use_bias = (bias is not None) and (activation is None)
    b = bias if use_bias else jnp.zeros((N,), x.dtype)
    eff_lr_mul = float(lr_mul) if use_bias else 0.0

    # Tile / pad so the kernel only ever sees (8,128)-aligned, lane-dense blocks.
    tm, Mp = _pick_tile(M, 8, 256)
    tk, Kp = _pick_tile(K, 128, 512)
    tn, Np = _pick_tile(N, 128, 256)

    xp = jnp.pad(x2, ((0, Mp - M), (0, Kp - K)))
    wp = jnp.pad(weight, ((0, Np - N), (0, Kp - K)))
    bp = jnp.pad(b, (0, Np - N)).reshape(1, Np)

    grid = (Mp // tm, Np // tn, Kp // tk)

    out_p = pl.pallas_call(
        partial(_equal_linear_kernel, scale=float(scale), lr_mul=eff_lr_mul),
        out_shape=jax.ShapeDtypeStruct((Mp, Np), x.dtype),
        grid_spec=pltpu.PrefetchScalarGridSpec(
            num_scalar_prefetch=0,
            grid=grid,
            in_specs=[
                pl.BlockSpec((tm, tk), lambda i, j, k: (i, k)),   # x tile
                pl.BlockSpec((tn, tk), lambda i, j, k: (j, k)),   # weight tile (N, K)
                pl.BlockSpec((1, tn), lambda i, j, k: (0, j)),    # bias tile
            ],
            out_specs=pl.BlockSpec((tm, tn), lambda i, j, k: (i, j)),
            scratch_shapes=[pltpu.VMEM((tm, tn), jnp.float32)],
        ),
        compiler_params=pltpu.CompilerParams(
            dimension_semantics=("parallel", "parallel", "arbitrary")),
    )(xp, wp, bp)

    return out_p[:M, :N].reshape(*lead, N)


if __name__ == "__main__":
    key = jax.random.PRNGKey(0)
    k_w, k_b, k_x = jax.random.split(key, 3)

    # Small, lane-friendly shapes consistent with the style mapping usage.
    batch, seq = 2, 8
    in_dim, out_dim = 512, 512
    lr_mul = 0.01
    bias_init = 0.3

    # EqualLinear init: weight ~ N(0, 1) / lr_mul, bias = bias_init.
    weight = jax.random.normal(k_w, (out_dim, in_dim), jnp.float32) / lr_mul
    bias = jnp.full((out_dim,), bias_init, jnp.float32)
    x = jax.random.normal(k_x, (batch, seq, in_dim), jnp.float32)

    scale = 1.0 / math.sqrt(in_dim) * lr_mul

    # --- bias path (activation=None) ---------------------------------------
    out = equal_linear(x, weight, bias, lr_mul=lr_mul)
    out = jax.block_until_ready(out)
    ref = x @ (weight * scale).T + bias * lr_mul
    assert out.shape == ref.shape
    assert np.allclose(np.asarray(out), np.asarray(ref), atol=2e-2, rtol=2e-2)

    # --- activation path (linear without bias, per the reference code) ------
    out_act = equal_linear(x, weight, bias, lr_mul=lr_mul, activation="fused_lrelu")
    out_act = jax.block_until_ready(out_act)
    ref_act = x @ (weight * scale).T
    assert np.allclose(np.asarray(out_act), np.asarray(ref_act), atol=2e-2, rtol=2e-2)

    print("KERNEL_OK")
</pallas_src>

<mosaic_0001>
module attributes {stable_mosaic.version = 11 : i64} {
  func.func @_equal_linear_kernel(%arg0: i32, %arg1: i32, %arg2: i32, %arg3: memref<16x512xf32, #tpu.memory_space<vmem>>, %arg4: memref<256x512xf32, #tpu.memory_space<vmem>>, %arg5: memref<1x256xf32, #tpu.memory_space<vmem>>, %arg6: memref<16x256xf32, #tpu.memory_space<vmem>>, %arg7: memref<16x256xf32, #tpu.memory_space<vmem>>) attributes {dimension_semantics = [#tpu.dimension_semantics<parallel>, #tpu.dimension_semantics<parallel>, #tpu.dimension_semantics<arbitrary>], iteration_bounds = array<i64: 1, 2, 1>, scalar_prefetch = 0 : i64, scratch_operands = 1 : i64, tpu.core_type = #tpu.core_type<tc>, window_params = [{transform_indices = @transform_0, window_bounds = array<i64: 16, 512>}, {transform_indices = @transform_1, window_bounds = array<i64: 256, 512>}, {transform_indices = @transform_2, window_bounds = array<i64: 1, 256>}, {transform_indices = @transform_3, window_bounds = array<i64: 16, 256>}]} {
    %c0_i32 = arith.constant 0 : i32
    %0 = arith.cmpi eq, %arg2, %c0_i32 : i32
    %1 = arith.extui %0 : i1 to i32
    %c0_i32_0 = arith.constant 0 : i32
    %2 = arith.cmpi ne, %1, %c0_i32_0 : i32
    scf.if %2 {
      %cst_10 = arith.constant 0.000000e+00 : f32
      %12 = vector.broadcast %cst_10 : f32 to vector<16x256xf32>
      %c0_11 = arith.constant 0 : index
      %c0_12 = arith.constant 0 : index
      %13 = vector.load %arg7[%c0_11, %c0_12] : memref<16x256xf32, #tpu.memory_space<vmem>>, vector<16x256xf32>
      tpu.vector_store %arg7[%c0_11, %c0_12], %12 {strides = array<i32>} : memref<16x256xf32, #tpu.memory_space<vmem>>, vector<16x256xf32>,
    } else {
    }
    %c0 = arith.constant 0 : index
    %c0_1 = arith.constant 0 : index
    %3 = vector.load %arg7[%c0, %c0_1] : memref<16x256xf32, #tpu.memory_space<vmem>>, vector<16x256xf32>
    %c0_2 = arith.constant 0 : index
    %c0_3 = arith.constant 0 : index
    %4 = vector.load %arg3[%c0_2, %c0_3] : memref<16x512xf32, #tpu.memory_space<vmem>>, vector<16x512xf32>
    %c0_4 = arith.constant 0 : index
    %c0_5 = arith.constant 0 : index
    %5 = vector.load %arg4[%c0_4, %c0_5] : memref<256x512xf32, #tpu.memory_space<vmem>>, vector<256x512xf32>
    %cst = arith.constant dense<0.000000e+00> : vector<16x256xf32>
    %6 = tpu.matmul %4, %5, %cst {dimension_numbers = #tpu.dot_dimension_numbers<[1], [1], [0], [0], [0, 0, 1, 0], [], []>} : vector<16x512xf32>, vector<256x512xf32>, vector<16x256xf32> -> vector<16x256xf32>
    %7 = arith.addf %3, %6 : vector<16x256xf32>
    %c0_6 = arith.constant 0 : index
    %c0_7 = arith.constant 0 : index
    %8 = vector.load %arg7[%c0_6, %c0_7] : memref<16x256xf32, #tpu.memory_space<vmem>>, vector<16x256xf32>
    tpu.vector_store %arg7[%c0_6, %c0_7], %7 {strides = array<i32>} : memref<16x256xf32, #tpu.memory_space<vmem>>, vector<16x256xf32>,
    %c0_i32_8 = arith.constant 0 : i32
    %9 = arith.cmpi eq, %arg2, %c0_i32_8 : i32
    %10 = arith.extui %9 : i1 to i32
    %c0_i32_9 = arith.constant 0 : i32
    %11 = arith.cmpi ne, %10, %c0_i32_9 : i32
    scf.if %11 {
      %c0_10 = arith.constant 0 : index
      %c0_11 = arith.constant 0 : index
      %12 = vector.load %arg7[%c0_10, %c0_11] : memref<16x256xf32, #tpu.memory_space<vmem>>, vector<16x256xf32>
      %cst_12 = arith.constant 4.41941724E-4 : f32
      %13 = vector.broadcast %cst_12 : f32 to vector<16x256xf32>
      %14 = arith.mulf %12, %13 : vector<16x256xf32>
      %c0_13 = arith.constant 0 : index
      %c0_14 = arith.constant 0 : index
      %15 = vector.load %arg5[%c0_13, %c0_14] : memref<1x256xf32, #tpu.memory_space<vmem>>, vector<1x256xf32>
      %cst_15 = arith.constant 0.00999999977 : f32
      %16 = vector.broadcast %cst_15 : f32 to vector<1x256xf32>
      %17 = arith.mulf %15, %16 : vector<1x256xf32>
      %18 = vector.broadcast %17 : vector<1x256xf32> to vector<16x256xf32>
      %19 = arith.addf %14, %18 : vector<16x256xf32>
      %c0_16 = arith.constant 0 : index
      %c0_17 = arith.constant 0 : index
      %20 = vector.load %arg6[%c0_16, %c0_17] : memref<16x256xf32, #tpu.memory_space<vmem>>, vector<16x256xf32>
      tpu.vector_store %arg6[%c0_16, %c0_17], %19 {strides = array<i32>} : memref<16x256xf32, #tpu.memory_space<vmem>>, vector<16x256xf32>,
    } else {
    }
    return
  }
  func.func @transform_0(%arg0: i32, %arg1: i32, %arg2: i32) -> (i32, i32) {
    %c0_i32 = arith.constant 0 : i32
    return %arg0, %arg2 : i32, i32
  }
  func.func @transform_1(%arg0: i32, %arg1: i32, %arg2: i32) -> (i32, i32) {
    %c0_i32 = arith.constant 0 : i32
    return %arg1, %arg2 : i32, i32
  }
  func.func @transform_2(%arg0: i32, %arg1: i32, %arg2: i32) -> (i32, i32) {
    %c0_i32 = arith.constant 0 : i32
    %c0_i32_0 = arith.constant 0 : i32
    return %c0_i32, %arg1 : i32, i32
  }
  func.func @transform_3(%arg0: i32, %arg1: i32, %arg2: i32) -> (i32, i32) {
    %c0_i32 = arith.constant 0 : i32
    return %arg0, %arg1 : i32, i32
  }
}

</mosaic_0001>

<bundles_post_ra>
// kernel: tpu_custom_call.1
= control target key start
LH: loop header
LB: loop body
LE: loop exit
PB: predicated region body
PF: predicated region fallthrough
CT: control target
= control target key end

     0   :  { %8 = vsyncpa [#allocation4], 0  ;;  %s1509_s0 = inlined_call_operand.hbm [shape: f32[16,512], index: 0, kind: input, shape index: {}]   ;;  %s1510_s1 = inlined_call_operand.hbm [shape: f32[512,512], index: 1, kind: input, shape index: {}]   ;;  %s1511_s2 = inlined_call_operand.vmem [shape: f32[1,512], index: 2, kind: input, shape index: {}]   ;;  %s1512_s3 = inlined_call_operand.hbm [shape: f32[16,512], index: 3, kind: output, shape index: {}]  }
   0x1   :  { %9 = vsyncpa [#allocation7], 0 }
   0x2   :  { %11 = vsyncpa [#allocation7 + $0x1], 0 }
   0x3   :  { %12 = vsyncpa [#allocation5], 0 }
   0x4   :  { %14 = vsyncpa [#allocation5 + $0x1], 0  ;;  %s1149_s12 = smov 0   ;;  %s1151_s13 = smov 0  }
   0x5   :  { %s1153_s14 = smov 0   ;;  %s1155_s15 = smov 0  }
   0x6   :  { %s1157_s16 = smov 0   ;;  %s1159_s17 = smov 0  }
   0x7 LB: > { %s743_s18 = sadd.s32 4294967295, %s1119_s17   ;;  %s744_s19 = sadd.s32 4294967294, %s1119_s17   ;;  %s1119_s17 = sphi %s1159_s17, %s20_s17   ;;  %s1115_s16 = sphi %s1157_s16, %s1536_s16   ;;  %s1111_s15 = sphi %s1155_s15, %s1535_s15   ;;  %s1107_s14 = sphi %s1153_s14, %s1534_s14   ;;  %s1103_s13 = sphi %s1151_s13, %s1533_s13   ;;  %s1099_s12 = sphi %s1149_s12, %s1532_s12  }
   0x8   : > { %p89_p0 = scmp.ne.s32.totalorder %s1103_s13, %s1099_s12  ;;  %p1183_p1 = scmp.eq.s32.totalorder %s743_s18, 0 }
   0x9   : > { %p1187_p2 = scmp.eq.s32.totalorder %s743_s18, 1  ;;  %p147_p3 = scmp.eq.s32.totalorder %s744_s19, 1 }
   0xa   : > { %s1517_s20 = scalar_select %p1183_p1, 1, 0 }
   0xb   : > { %s1518_s21 = scalar_select %p1187_p2, 1, 0 }
   0xc   : > { %p1193_p4 = por %p1183_p1, %p89_p0  ;;  %p745_p5 = scmp.ge.s32.totalorder %s1119_s17, 1 }
   0xd   : > { %p1198_p6 = por %p147_p3, %p89_p0  ;;  %p154_p7 = scmp.lt.s32.totalorder %s1119_s17, 3 }
   0xe   : > { %s1519_s22 = scalar_select %p1193_p4, 1, 0 }
   0xf   : > { %s1520_s23 = scalar_select %p1198_p6, 1, 0 }
  0x10   : > { %p1203_p8 = pnand %p745_p5, %p154_p7  ;;  %s1121_s25 = smov [#allocation3]  }
  0x11   : > { %s172_s26 = sshll.u32 %s1121_s25, 4  ;;  %s35_s28 = sadd.s32 1, %s1115_s16  ;;  %s173_s26 = int_to_ptr.vmem [resolvable:$true] %s172_s26 }
  0x12   : > { %s1521_s24 = scalar_select %p1203_p8, 1, 0 }
  0x13   : > { %p905_p9 = pneg %p1203_p8  ;;  %s975_s4 = scalar_lea.hbm %s1509_s0, 1024 }
  0x14   : > { %p976_p12 = scmp.ne.s32.totalorder %s1509_s0, %s975_s4  ;;  %p982_p5 = scmp.lt.u32.totalorder %s975_s4, %s1509_s0 }
  0x15   : > { %p1212_p11 = pnand %p905_p9, %p1183_p1 }
  0x17   : > { %p977_p13 = pneg %p1212_p11 }
  0x19   : > { %p978_p0 = pnand %p977_p13, %p976_p12 }
  0x1b   : > { %p979_p3 = pneg %p978_p0 }
  0x1d   : > { %p984_p7 = pnand %p982_p5, %p979_p3 }
  0x1f   : > { %987 = shalt.err (!%p984_p7)
}
  0x20   : > { %s988_s9 = scalar_lea.vmem %s173_s26, 1024  ;;  %p996_p4 = scmp.lt.s32.totalorder %s173_s26, %s173_s26 }
  0x21   : > { %p989_p9 = scmp.ne.s32.totalorder %s173_s26, %s988_s9  ;;  %p997_p1 = scmp.lt.s32.totalorder %s988_s9, %s988_s9 }
  0x23   : > { %p991_p10 = pnand %p989_p9, %p977_p13  ;;  %p998_p8 = por %p997_p1, %p996_p4 }
  0x25   : > { %p992_p6 = pneg %p991_p10 }
  0x27   : > { %p999_p2 = pnand %p998_p8, %p992_p6 }
  0x29   : > { %1002 = shalt.err (!%p999_p2)
}
  0x2a   : > { %s1122_s10 = smov 512   ;;  %s1123_s11 = smov 32  }
  0x2b   : > { %908 = dma.hbm_to_vmem [thread:$0]  (!%p1212_p11), %s1509_s0, 1024, %s173_s26, [#allocation4], %s1122_s10, %s1122_s10, %s1123_s11  }
  0x2c   : > { %p37_p1 = scmp.ge.s32.totalorder %s35_s28, 2  ;;  %s76_s25 = sadd.s32 1, %s1107_s14 }
  0x2d   : > { %p83_p2 = scmp.ne.s32.totalorder %s1107_s14, %s1103_s13  ;;  %p84_p4 = scmp.eq.s32.totalorder %s1119_s17, 0 }
  0x2e   : > { %s1538_s28 = smov (%p37_p1, %s35_s28), 0  ;;  %p1524_p8 = scmp.ne.s32.totalorder %s1518_s21, 0 }
  0x2f   : > { %p1242_p6 = por %p84_p4, %p83_p2  ;;  %s71_s30 = ssub.s32 %s1115_s16, %s1538_s28 }
  0x30   : > { %p1248_p10 = por %p1524_p8, %p83_p2  ;;  %p918_p12 = scmp.lt.s32.totalorder %s1119_s17, 2 }
  0x31   : > { %p74_p11 = scmp.eq.s32.totalorder %s71_s30, 0  ;;  %s186_s26 = sand.u32 1, %s1107_s14  }
  0x32   : > { %s748_s4 = sshll.u32 %s186_s26, 10  ;;  %s763_s6 = sshll.u32 %s1115_s16, 14 }
  0x33   : > { %s1257_s5 = scalar_select %p74_p11, %s1107_s14, %s76_s25  }
  0x34   : > { %s1263_s9 = scalar_lea.hbm %s1510_s1, %s763_s6  ;;  %s190_s21 = scalar_lea.vmem [#allocation6], %s748_s4 }
  0x35   : > { %s200_s18 = sshll.u32 %s190_s21, 4  ;;  %p1269_p13 = pnand %p918_p12, %p1242_p6  ;;  %s1265_s18 = int_to_ptr.vmem [resolvable:$true] %s200_s18 }
  0x36   : > { %s1273_s25 = scalar_lea.sflag [#allocation7], %s186_s26  ;;  %s1003_s30 = scalar_lea.hbm %s1263_s9, 16384 }
  0x37   : > { %p1004_p0 = scmp.ne.s32.totalorder %s1263_s9, %s1003_s30  ;;  %p1005_p3 = pneg %p1269_p13 }
  0x38   : > { %s1008_s29 = scalar_lea.hbm %s1510_s1, 32768  ;;  %p1009_p9 = scmp.lt.u32.totalorder %s1263_s9, %s1510_s1 }
  0x39   : > { %p1006_p5 = pnand %p1005_p3, %p1004_p0  ;;  %p1010_p1 = scmp.lt.u32.totalorder %s1008_s29, %s1003_s30 }
  0x3a   : > { %p1012_p4 = scmp.lt.u32.totalorder %s1003_s30, %s1263_s9 }
  0x3b   : > { %p1007_p7 = pneg %p1006_p5  ;;  %p1011_p2 = por %p1010_p1, %p1009_p9 }
  0x3d   : > { %p1013_p6 = por %p1012_p4, %p1011_p2 }
  0x3f   : > { %p1014_p8 = pnand %p1013_p6, %p1007_p7 }
  0x41   : > { %1017 = shalt.err (!%p1014_p8)
}
  0x42   : > { %s1018_s26 = scalar_lea.vmem %s1265_s18, 16384  ;;  %s1124_s21 = smov [#allocation6]  }
  0x43   : > { %p1019_p12 = scmp.ne.s32.totalorder %s1265_s18, %s1018_s26  ;;  %s1023_s4 = sshll.u32 %s1124_s21, 4  ;;  %s1024_s4 = int_to_ptr.vmem [resolvable:$false] %s1023_s4 }
  0x44   : > { %s1025_s6 = scalar_lea.vmem %s1024_s4, 32768  ;;  %p1026_p5 = scmp.lt.s32.totalorder %s1265_s18, %s1024_s4 }
  0x45   : > { %p1021_p11 = pnand %p1019_p12, %p1005_p3  ;;  %p1027_p9 = scmp.lt.s32.totalorder %s1025_s6, %s1018_s26 }
  0x47   : > { %p1022_p0 = pneg %p1021_p11  ;;  %p1028_p1 = por %p1027_p9, %p1026_p5 }
  0x49   : > { %p1029_p2 = pnand %p1028_p1, %p1022_p0 }
  0x4b   : > { %1032 = shalt.err (!%p1029_p2)
}
  0x4c   : > { %912 = dma.hbm_to_vmem [thread:$0]  (!%p1269_p13), %s1263_s9, 16384, %s1265_s18, %s1273_s25, %s1122_s10, %s1122_s10, %s1123_s11  }
  0x4d   : > { %p1527_p3 = scmp.ne.s32.totalorder %s1521_s24, 0 }
  0x4e   : > { %p1528_p7 = scmp.ne.s32.totalorder (!%p1527_p3), %s1517_s20, 0 }
  0x4f   : > { %220 = sbr.rel (%p1527_p3) target bundleno = 463 (0x1cf), region = 32 }
  0x56   : > { %1086 = dma.done.wait (%p1528_p7), [#allocation4], 1024  }
  0x57   : > { %1088 = vsyncadd (%p1528_p7), [#allocation4], 4294966272  ;;  %s1311_s30 = sand.u32 1, %s1103_s13   ;;  %p1529_p13 = scmp.ne.s32.totalorder %s1519_s22, 0 }
  0x58   : > { %s754_s19 = sshll.u32 %s1311_s30, 10  ;;  %s227_s29 = scalar_lea.sflag [#allocation7], %s1311_s30 }
  0x59   : > { %s1315_s7 = scalar_lea.vmem [#allocation6], %s754_s19 }
  0x5a   : > { %1090 = dma.done.wait (%p1529_p13), %s227_s29, 16384  }
  0x5b   : > { %1092 = vsyncadd (%p1529_p13), %s227_s29, 4294950912  ;;  %v289_v0 = vld [vmem:[%s1315_s7 + $0x8] sm:$0xff]  ;;  %v291_v2 = vld [vmem:[%s1315_s7 + $0x18] sm:$0xff]  ;;  %s756_s20 = sshll.u32 %s1111_s15, 1  ;;  %s755_s11 = sshll.u32 %s1311_s30, 5 }
  0x5c   : > { %v293_v1 = vld [vmem:[%s1315_s7 + $0x28] sm:$0xff]  ;;  %v295_v4 = vld [vmem:[%s1315_s7 + $0x38] sm:$0xff]  ;;  %v288_v5 = vld [vmem:[%s1315_s7] sm:$0xff]  ;;  %p262_p4 = scmp.lt.s32.totalorder %s756_s20, 3  ;;  %s256_s9 = scalar_lea.vmem [#allocation8], %s755_s11 }
  0x5d   : > { %v765_v3 = vpack.c.bf16 %v293_v1, %v289_v0  ;;  %v292_v6 = vld [vmem:[%s1315_s7 + $0x20] sm:$0xff]  ;;  %v829_v7 = vpack.c.bf16 %v295_v4, %v291_v2  ;;  %v290_v9 = vld [vmem:[%s1315_s7 + $0x10] sm:$0xff]  ;;  %v297_v11 = vld [vmem:[%s1315_s7 + $0x48] sm:$0xff]  ;;  %s627_s18 = sshll.u32 %s256_s9, 4  ;;  %s764_s25 = sshll.u32 %s1111_s15, 8  ;;  %s1455_s18 = int_to_ptr.vmem [resolvable:$true] %s627_s18 }
  0x5e   : > { %v767_v8 = vpack.c.bf16 %v292_v6, %v288_v5  ;;  %v294_v10 = vld [vmem:[%s1315_s7 + $0x30] sm:$0xff]  ;;  %v301_v13 = vld [vmem:[%s1315_s7 + $0x68] sm:$0xff]  ;;  %v299_v14 = vld [vmem:[%s1315_s7 + $0x58] sm:$0xff]  ;;  %s1540_s20 = smov (!%p262_p4, %s756_s20), 3  ;;  %s1460_s21 = scalar_lea.hbm %s1512_s3, %s764_s25 }
  0x5f   : > { %766 = vmatprep.subr.bf16.mxu1 %v765_v3  ;;  %v831_v12 = vpack.c.bf16 %v294_v10, %v290_v9  ;;  %v303_v15 = vld [vmem:[%s1315_s7 + $0x78] sm:$0xff]  ;;  %830 = vmatprep.subr.bf16.mxu0 %v829_v7  ;;  %v769_v16 = vpack.c.bf16 %v301_v13, %v297_v11  ;;  %v296_v18 = vld [vmem:[%s1315_s7 + $0x40] sm:$0xff]  ;;  %v298_v20 = vld [vmem:[%s1315_s7 + $0x50] sm:$0xff]  ;;  %s264_s10 = scalar_lea.vmem %s1511_s2, %s1540_s20  ;;  %s611_s4 = scalar_lea.sflag [#allocation5], %s1311_s30 }
  0x60   : > { %768 = vmatpush1.bf16.xpose.msra.mxu1 %v767_v8  ;;  %v833_v17 = vpack.c.bf16 %v303_v15, %v299_v14  ;;  %v300_v19 = vld [vmem:[%s1315_s7 + $0x60] sm:$0xff]  ;;  %v302_v21 = vld [vmem:[%s1315_s7 + $0x70] sm:$0xff]  ;;  %v305_v22 = vld [vmem:[%s1315_s7 + $0x88] sm:$0xff]  ;;  %s1033_s15 = scalar_lea.vmem %s1455_s18, 512  ;;  %s1125_s6 = smov [#allocation8]  }
  0x61   : > { %832 = vmatpush1.bf16.xpose.msra.mxu0 %v831_v12  ;;  %770 = vmatprep.subr.bf16.mxu1 %v769_v16  ;;  %v309_v23 = vld [vmem:[%s1315_s7 + $0xa8] sm:$0xff]  ;;  %v307_v24 = vld [vmem:[%s1315_s7 + $0x98] sm:$0xff]  ;;  %v771_v26 = vpack.c.bf16 %v300_v19, %v296_v18  ;;  %v835_v27 = vpack.c.bf16 %v302_v21, %v298_v20  ;;  %v304_v30 = vld [vmem:[%s1315_s7 + $0x80] sm:$0xff]  ;;  %p1034_p6 = scmp.ne.s32.totalorder %s1455_s18, %s1033_s15  ;;  %s1037_s19 = sshll.u32 %s1125_s6, 4  ;;  %s1038_s19 = int_to_ptr.vmem [resolvable:$false] %s1037_s19 }
  0x62   : > { %834 = vmatprep.subr.bf16.mxu0 %v833_v17  ;;  %v311_v25 = vld [vmem:[%s1315_s7 + $0xb8] sm:$0xff]  ;;  %v773_v28 = vpack.c.bf16 %v309_v23, %v305_v22  ;;  %v308_v31 = vld [vmem:[%s1315_s7 + $0xa0] sm:$0xff]  ;;  %v306_v32 = vld [vmem:[%s1315_s7 + $0x90] sm:$0xff]  ;;  %s1039_s29 = scalar_lea.vmem %s1038_s19, 1024  ;;  %p1040_p11 = scmp.lt.s32.totalorder %s1455_s18, %s1038_s19 }
  0x63   : > { %v837_v29 = vpack.c.bf16 %v311_v25, %v307_v24  ;;  %v310_v33 = vld [vmem:[%s1315_s7 + $0xb0] sm:$0xff]  ;;  %v313_v34 = vld [vmem:[%s1315_s7 + $0xc8] sm:$0xff]  ;;  %v315_v36 = vld [vmem:[%s1315_s7 + $0xd8] sm:$0xff]  ;;  %v775_v38 = vpack.c.bf16 %v308_v31, %v304_v30  ;;  %p1035_p8 = pnand %p1034_p6, %p1248_p10  ;;  %p1041_p0 = scmp.lt.s32.totalorder %s1039_s29, %s1033_s15 }
  0x64   : > { %v317_v35 = vld [vmem:[%s1315_s7 + $0xe8] sm:$0xff]  ;;  %v319_v37 = vld [vmem:[%s1315_s7 + $0xf8] sm:$0xff]  ;;  %v839_v39 = vpack.c.bf16 %v310_v33, %v306_v32  ;;  %v312_v42 = vld [vmem:[%s1315_s7 + $0xc0] sm:$0xff] }
  0x65   : > { %v777_v40 = vpack.c.bf16 %v317_v35, %v313_v34  ;;  %v841_v41 = vpack.c.bf16 %v319_v37, %v315_v36  ;;  %v316_v43 = vld [vmem:[%s1315_s7 + $0xe0] sm:$0xff]  ;;  %v314_v44 = vld [vmem:[%s1315_s7 + $0xd0] sm:$0xff]  ;;  %v321_v46 = vld [vmem:[%s1315_s7 + $0x108] sm:$0xff]  ;;  %p1036_p12 = pneg %p1035_p8  ;;  %p1042_p5 = por %p1041_p0, %p1040_p11 }
  0x66   : > { %v318_v45 = vld [vmem:[%s1315_s7 + $0xf0] sm:$0xff]  ;;  %v325_v47 = vld [vmem:[%s1315_s7 + $0x128] sm:$0xff]  ;;  %v323_v48 = vld [vmem:[%s1315_s7 + $0x118] sm:$0xff]  ;;  %v779_v50 = vpack.c.bf16 %v316_v43, %v312_v42 }
  0x67   : > { %v327_v49 = vld [vmem:[%s1315_s7 + $0x138] sm:$0xff]  ;;  %v843_v51 = vpack.c.bf16 %v318_v45, %v314_v44  ;;  %v781_v52 = vpack.c.bf16 %v325_v47, %v321_v46  ;;  %v320_v54 = vld [vmem:[%s1315_s7 + $0x100] sm:$0xff]  ;;  %v322_v56 = vld [vmem:[%s1315_s7 + $0x110] sm:$0xff]  ;;  %p1043_p9 = pnand %p1042_p5, %p1036_p12 }
  0x68   : > { %772 = vmatpush1.bf16.xpose.msra.mxu1 %v771_v26  ;;  %v845_v53 = vpack.c.bf16 %v327_v49, %v323_v48  ;;  %v324_v55 = vld [vmem:[%s1315_s7 + $0x120] sm:$0xff]  ;;  %v326_v57 = vld [vmem:[%s1315_s7 + $0x130] sm:$0xff]  ;;  %v329_v58 = vld [vmem:[%s1315_s7 + $0x148] sm:$0xff] }
  0x69   : > { %836 = vmatpush1.bf16.xpose.msra.mxu0 %v835_v27  ;;  %774 = vmatprep.subr.bf16.mxu1 %v773_v28  ;;  %v333_v59 = vld [vmem:[%s1315_s7 + $0x168] sm:$0xff]  ;;  %v331_v60 = vld [vmem:[%s1315_s7 + $0x158] sm:$0xff]  ;;  %v783_v62 = vpack.c.bf16 %v324_v55, %v320_v54  ;;  %v847_v63 = vpack.c.bf16 %v326_v57, %v322_v56  ;;  %v328_v2 = vld [vmem:[%s1315_s7 + $0x140] sm:$0xff] }
  0x6a   : > { %838 = vmatprep.subr.bf16.mxu0 %v837_v29  ;;  %v335_v61 = vld [vmem:[%s1315_s7 + $0x178] sm:$0xff]  ;;  %v785_v0 = vpack.c.bf16 %v333_v59, %v329_v58  ;;  %v332_v3 = vld [vmem:[%s1315_s7 + $0x160] sm:$0xff]  ;;  %v330_v4 = vld [vmem:[%s1315_s7 + $0x150] sm:$0xff] }
  0x6b   : > { %v849_v1 = vpack.c.bf16 %v335_v61, %v331_v60  ;;  %v334_v5 = vld [vmem:[%s1315_s7 + $0x170] sm:$0xff]  ;;  %v337_v6 = vld [vmem:[%s1315_s7 + $0x188] sm:$0xff]  ;;  %v339_v8 = vld [vmem:[%s1315_s7 + $0x198] sm:$0xff]  ;;  %v787_v10 = vpack.c.bf16 %v332_v3, %v328_v2 }
  0x6c   : > { %v341_v7 = vld [vmem:[%s1315_s7 + $0x1a8] sm:$0xff]  ;;  %v343_v9 = vld [vmem:[%s1315_s7 + $0x1b8] sm:$0xff]  ;;  %v851_v11 = vpack.c.bf16 %v334_v5, %v330_v4  ;;  %v336_v16 = vld [vmem:[%s1315_s7 + $0x180] sm:$0xff] }
  0x6d   : > { %v789_v12 = vpack.c.bf16 %v341_v7, %v337_v6  ;;  %v853_v13 = vpack.c.bf16 %v343_v9, %v339_v8  ;;  %v281_v14 = vld [vmem:[#allocation3 + $0x8] sm:$0xff]  ;;  %v283_v15 = vld [vmem:[#allocation3 + $0x18] sm:$0xff]  ;;  %v340_v17 = vld [vmem:[%s1315_s7 + $0x1a0] sm:$0xff] }
  0x6e   : > { %480 = vmatprep.mubr.f32.mxu1 %v281_v14  ;;  %557 = vmatprep.mubr.f32.mxu0 %v283_v15  ;;  %v338_v18 = vld [vmem:[%s1315_s7 + $0x190] sm:$0xff]  ;;  %v345_v20 = vld [vmem:[%s1315_s7 + $0x1c8] sm:$0xff]  ;;  %v347_v22 = vld [vmem:[%s1315_s7 + $0x1d8] sm:$0xff]  ;;  %v791_v24 = vpack.c.bf16 %v340_v17, %v336_v16 }
  0x6f   : > { %v342_v19 = vld [vmem:[%s1315_s7 + $0x1b0] sm:$0xff]  ;;  %v349_v21 = vld [vmem:[%s1315_s7 + $0x1e8] sm:$0xff]  ;;  %v351_v23 = vld [vmem:[%s1315_s7 + $0x1f8] sm:$0xff] }
  0x70   : > { %776 = vmatpush1.bf16.xpose.msra.mxu1 %v775_v38  ;;  %v855_v25 = vpack.c.bf16 %v342_v19, %v338_v18  ;;  %v793_v26 = vpack.c.bf16 %v349_v21, %v345_v20  ;;  %v857_v27 = vpack.c.bf16 %v351_v23, %v347_v22  ;;  %v344_v28 = vld [vmem:[%s1315_s7 + $0x1c0] sm:$0xff]  ;;  %v346_v30 = vld [vmem:[%s1315_s7 + $0x1d0] sm:$0xff]  ;;  %v353_v32 = vld [vmem:[%s1315_s7 + $0x208] sm:$0xff] }
  0x71   : > { %840 = vmatpush1.bf16.xpose.msra.mxu0 %v839_v39  ;;  %778 = vmatprep.subr.bf16.mxu1 %v777_v40  ;;  %v348_v29 = vld [vmem:[%s1315_s7 + $0x1e0] sm:$0xff]  ;;  %v350_v31 = vld [vmem:[%s1315_s7 + $0x1f0] sm:$0xff]  ;;  %v357_v33 = vld [vmem:[%s1315_s7 + $0x228] sm:$0xff] }
  0x72   : > { %842 = vmatprep.subr.bf16.mxu0 %v841_v41  ;;  %v355_v34 = vld [vmem:[%s1315_s7 + $0x218] sm:$0xff]  ;;  %v795_v36 = vpack.c.bf16 %v348_v29, %v344_v28  ;;  %v859_v37 = vpack.c.bf16 %v350_v31, %v346_v30  ;;  %v797_v38 = vpack.c.bf16 %v357_v33, %v353_v32  ;;  %v352_v40 = vld [vmem:[%s1315_s7 + $0x200] sm:$0xff]  ;;  %v354_v42 = vld [vmem:[%s1315_s7 + $0x210] sm:$0xff] }
  0x73   : > { %v359_v35 = vld [vmem:[%s1315_s7 + $0x238] sm:$0xff]  ;;  %v356_v41 = vld [vmem:[%s1315_s7 + $0x220] sm:$0xff]  ;;  %v358_v43 = vld [vmem:[%s1315_s7 + $0x230] sm:$0xff] }
  0x74   : > { %v861_v39 = vpack.c.bf16 %v359_v35, %v355_v34  ;;  %v361_v44 = vld [vmem:[%s1315_s7 + $0x248] sm:$0xff]  ;;  %v363_v46 = vld [vmem:[%s1315_s7 + $0x258] sm:$0xff]  ;;  %v799_v48 = vpack.c.bf16 %v356_v41, %v352_v40  ;;  %v863_v49 = vpack.c.bf16 %v358_v43, %v354_v42  ;;  %v362_v54 = vld [vmem:[%s1315_s7 + $0x250] sm:$0xff] }
  0x75   : > { %v365_v45 = vld [vmem:[%s1315_s7 + $0x268] sm:$0xff]  ;;  %v367_v47 = vld [vmem:[%s1315_s7 + $0x278] sm:$0xff]  ;;  %v366_v55 = vld [vmem:[%s1315_s7 + $0x270] sm:$0xff] }
  0x76   : > { %v369_v56 = vld [vmem:[%s1315_s7 + $0x288] sm:$0xff]  ;;  %v371_v58 = vld [vmem:[%s1315_s7 + $0x298] sm:$0xff]  ;;  %v867_v61 = vpack.c.bf16 %v366_v55, %v362_v54  ;;  %v370_v2 = vld [vmem:[%s1315_s7 + $0x290] sm:$0xff] }
  0x77   : > { %v373_v57 = vld [vmem:[%s1315_s7 + $0x2a8] sm:$0xff]  ;;  %v375_v59 = vld [vmem:[%s1315_s7 + $0x2b8] sm:$0xff]  ;;  %v374_v3 = vld [vmem:[%s1315_s7 + $0x2b0] sm:$0xff] }
  0x78   : > { %780 = vmatpush1.bf16.xpose.msra.mxu1 %v779_v50  ;;  %v801_v50 = vpack.c.bf16 %v365_v45, %v361_v44  ;;  %v377_v4 = vld [vmem:[%s1315_s7 + $0x2c8] sm:$0xff]  ;;  %v379_v6 = vld [vmem:[%s1315_s7 + $0x2d8] sm:$0xff]  ;;  %v871_v9 = vpack.c.bf16 %v374_v3, %v370_v2  ;;  %v378_v14 = vld [vmem:[%s1315_s7 + $0x2d0] sm:$0xff] }
  0x79   : > { %844 = vmatpush1.bf16.xpose.msra.mxu0 %v843_v51  ;;  %782 = vmatprep.subr.bf16.mxu1 %v781_v52  ;;  %v865_v51 = vpack.c.bf16 %v367_v47, %v363_v46  ;;  %v360_v52 = vld [vmem:[%s1315_s7 + $0x240] sm:$0xff]  ;;  %v381_v5 = vld [vmem:[%s1315_s7 + $0x2e8] sm:$0xff]  ;;  %v383_v7 = vld [vmem:[%s1315_s7 + $0x2f8] sm:$0xff] }
  0x7a   : > { %846 = vmatprep.subr.bf16.mxu0 %v845_v53  ;;  %v364_v53 = vld [vmem:[%s1315_s7 + $0x260] sm:$0xff]  ;;  %v382_v15 = vld [vmem:[%s1315_s7 + $0x2f0] sm:$0xff]  ;;  %v385_v16 = vld [vmem:[%s1315_s7 + $0x308] sm:$0xff] }
  0x7b   : > { %v803_v60 = vpack.c.bf16 %v364_v53, %v360_v52  ;;  %v389_v17 = vld [vmem:[%s1315_s7 + $0x328] sm:$0xff]  ;;  %v387_v18 = vld [vmem:[%s1315_s7 + $0x318] sm:$0xff]  ;;  %v875_v21 = vpack.c.bf16 %v382_v15, %v378_v14  ;;  %v280_v2 = vld [vmem:[#allocation3] sm:$0xff] }
  0x7c   : > { %v391_v19 = vld [vmem:[%s1315_s7 + $0x338] sm:$0xff]  ;;  %v813_v22 = vpack.c.bf16 %v389_v17, %v385_v16  ;;  %v393_v28 = vld [vmem:[%s1315_s7 + $0x348] sm:$0xff]  ;;  %v282_v3 = vld [vmem:[#allocation3 + $0x10] sm:$0xff] }
  0x7d   : > { %v877_v23 = vpack.c.bf16 %v391_v19, %v387_v18  ;;  %v397_v29 = vld [vmem:[%s1315_s7 + $0x368] sm:$0xff]  ;;  %v395_v30 = vld [vmem:[%s1315_s7 + $0x358] sm:$0xff] }
  0x7e   : > { %v399_v31 = vld [vmem:[%s1315_s7 + $0x378] sm:$0xff]  ;;  %v817_v34 = vpack.c.bf16 %v397_v29, %v393_v28  ;;  %v401_v40 = vld [vmem:[%s1315_s7 + $0x388] sm:$0xff] }
  0x7f   : > { %v881_v35 = vpack.c.bf16 %v399_v31, %v395_v30  ;;  %v405_v41 = vld [vmem:[%s1315_s7 + $0x3a8] sm:$0xff]  ;;  %v403_v42 = vld [vmem:[%s1315_s7 + $0x398] sm:$0xff] }
  0x80   : > { %784 = vmatpush1.bf16.xpose.msra.mxu1 %v783_v62  ;;  %v805_v62 = vpack.c.bf16 %v373_v57, %v369_v56  ;;  %v407_v43 = vld [vmem:[%s1315_s7 + $0x3b8] sm:$0xff]  ;;  %v821_v46 = vpack.c.bf16 %v405_v41, %v401_v40  ;;  %v409_v52 = vld [vmem:[%s1315_s7 + $0x3c8] sm:$0xff] }
  0x81   : > { %848 = vmatpush1.bf16.xpose.msra.mxu0 %v847_v63  ;;  %786 = vmatprep.subr.bf16.mxu1 %v785_v0  ;;  %v869_v63 = vpack.c.bf16 %v375_v59, %v371_v58  ;;  %v368_v0 = vld [vmem:[%s1315_s7 + $0x280] sm:$0xff]  ;;  %v885_v47 = vpack.c.bf16 %v407_v43, %v403_v42  ;;  %v413_v53 = vld [vmem:[%s1315_s7 + $0x3e8] sm:$0xff]  ;;  %v411_v54 = vld [vmem:[%s1315_s7 + $0x3d8] sm:$0xff] }
  0x82   : > { %850 = vmatprep.subr.bf16.mxu0 %v849_v1  ;;  %v372_v1 = vld [vmem:[%s1315_s7 + $0x2a0] sm:$0xff]  ;;  %v415_v55 = vld [vmem:[%s1315_s7 + $0x3f8] sm:$0xff]  ;;  %v825_v58 = vpack.c.bf16 %v413_v53, %v409_v52 }
  0x83   : > { %v807_v8 = vpack.c.bf16 %v372_v1, %v368_v0  ;;  %v889_v59 = vpack.c.bf16 %v415_v55, %v411_v54 }
  0x88   : > { %788 = vmatpush1.bf16.xpose.msra.mxu1 %v787_v10  ;;  %v809_v10 = vpack.c.bf16 %v381_v5, %v377_v4  ;;  %v285_v4 = vld [vmem:[#allocation3 + $0x28] sm:$0xff]  ;;  %v287_v5 = vld [vmem:[#allocation3 + $0x38] sm:$0xff] }
  0x89   : > { %852 = vmatpush1.bf16.xpose.msra.mxu0 %v851_v11  ;;  %790 = vmatprep.subr.bf16.mxu1 %v789_v12  ;;  %v873_v11 = vpack.c.bf16 %v383_v7, %v379_v6  ;;  %v376_v12 = vld [vmem:[%s1315_s7 + $0x2c0] sm:$0xff]  ;;  %v286_v7 = vld [vmem:[#allocation3 + $0x30] sm:$0xff] }
  0x8a   : > { %854 = vmatprep.subr.bf16.mxu0 %v853_v13  ;;  %v380_v13 = vld [vmem:[%s1315_s7 + $0x2e0] sm:$0xff] }
  0x8b   : > { %v811_v20 = vpack.c.bf16 %v380_v13, %v376_v12  ;;  %v284_v6 = vld [vmem:[#allocation3 + $0x20] sm:$0xff] }
  0x90   : > { %792 = vmatpush1.bf16.xpose.msra.mxu1 %v791_v24  ;;  %v384_v24 = vld [vmem:[%s1315_s7 + $0x300] sm:$0xff] }
  0x91   : > { %856 = vmatpush1.bf16.xpose.msra.mxu0 %v855_v25  ;;  %794 = vmatprep.subr.bf16.mxu1 %v793_v26  ;;  %v388_v25 = vld [vmem:[%s1315_s7 + $0x320] sm:$0xff]  ;;  %v386_v26 = vld [vmem:[%s1315_s7 + $0x310] sm:$0xff] }
  0x92   : > { %858 = vmatprep.subr.bf16.mxu0 %v857_v27  ;;  %v390_v27 = vld [vmem:[%s1315_s7 + $0x330] sm:$0xff]  ;;  %v815_v32 = vpack.c.bf16 %v388_v25, %v384_v24 }
  0x93   : > { %v879_v33 = vpack.c.bf16 %v390_v27, %v386_v26 }
  0x98   : > { %796 = vmatpush1.bf16.xpose.msra.mxu1 %v795_v36  ;;  %v392_v36 = vld [vmem:[%s1315_s7 + $0x340] sm:$0xff] }
  0x99   : > { %860 = vmatpush1.bf16.xpose.msra.mxu0 %v859_v37  ;;  %798 = vmatprep.subr.bf16.mxu1 %v797_v38  ;;  %v396_v37 = vld [vmem:[%s1315_s7 + $0x360] sm:$0xff]  ;;  %v394_v38 = vld [vmem:[%s1315_s7 + $0x350] sm:$0xff] }
  0x9a   : > { %862 = vmatprep.subr.bf16.mxu0 %v861_v39  ;;  %v398_v39 = vld [vmem:[%s1315_s7 + $0x370] sm:$0xff]  ;;  %v819_v44 = vpack.c.bf16 %v396_v37, %v392_v36 }
  0x9b   : > { %v883_v45 = vpack.c.bf16 %v398_v39, %v394_v38 }
  0xa0   : > { %800 = vmatpush1.bf16.xpose.msra.mxu1 %v799_v48  ;;  %v400_v48 = vld [vmem:[%s1315_s7 + $0x380] sm:$0xff] }
  0xa1   : > { %864 = vmatpush1.bf16.xpose.msra.mxu0 %v863_v49  ;;  %802 = vmatprep.subr.bf16.mxu1 %v801_v50  ;;  %v404_v49 = vld [vmem:[%s1315_s7 + $0x3a0] sm:$0xff]  ;;  %v402_v50 = vld [vmem:[%s1315_s7 + $0x390] sm:$0xff] }
  0xa2   : > { %866 = vmatprep.subr.bf16.mxu0 %v865_v51  ;;  %v406_v51 = vld [vmem:[%s1315_s7 + $0x3b0] sm:$0xff]  ;;  %v823_v56 = vpack.c.bf16 %v404_v49, %v400_v48 }
  0xa3   : > { %v887_v57 = vpack.c.bf16 %v406_v51, %v402_v50 }
  0xa8   : > { %804 = vmatpush1.bf16.xpose.msra.mxu1 %v803_v60  ;;  %v408_v60 = vld [vmem:[%s1315_s7 + $0x3c0] sm:$0xff] }
  0xa9   : > { %868 = vmatpush1.bf16.xpose.msra.mxu0 %v867_v61  ;;  %806 = vmatprep.subr.bf16.mxu1 %v805_v62  ;;  %v412_v61 = vld [vmem:[%s1315_s7 + $0x3e0] sm:$0xff]  ;;  %v410_v62 = vld [vmem:[%s1315_s7 + $0x3d0] sm:$0xff] }
  0xaa   : > { %870 = vmatprep.subr.bf16.mxu0 %v869_v63  ;;  %v414_v63 = vld [vmem:[%s1315_s7 + $0x3f0] sm:$0xff]  ;;  %v827_v0 = vpack.c.bf16 %v412_v61, %v408_v60 }
  0xab   : > { %v891_v1 = vpack.c.bf16 %v414_v63, %v410_v62 }
  0xb0   : > { %808 = vmatpush1.bf16.xpose.msra.mxu1 %v807_v8  ;;  %v592_v8 = vlaneseq }
  0xb1   : > { %872 = vmatpush1.bf16.xpose.msra.mxu0 %v871_v9  ;;  %810 = vmatprep.subr.bf16.mxu1 %v809_v10  ;;  %v589_v10 = vld [vmem:[%s264_s10] sm:$0x3] }
  0xb2   : > { %874 = vmatprep.subr.bf16.mxu0 %v873_v11  ;;  %v593_v9 = vshrl.u32 %v592_v8, 7  ;;  %v590_v11 = vmul.f32 0.01, %v589_v10 }
  0xb4   : > { %v594_v12 = vsub.s32 0, %v593_v9  ;;  %v598_v13 = vsub.s32 1, %v593_v9 }
  0xb6   : > { %v595_v18 = vrot.slane %v590_v11, %v594_v12 }
  0xb8   : > { %812 = vmatpush1.bf16.xpose.msra.mxu1 %v811_v20 }
  0xb9   : > { %876 = vmatpush1.bf16.xpose.msra.mxu0 %v875_v21  ;;  %814 = vmatprep.subr.bf16.mxu1 %v813_v22  ;;  %v599_v21 = vrot.slane %v590_v11, %v598_v13 }
  0xba   : > { %878 = vmatprep.subr.bf16.mxu0 %v877_v23 }
  0xc0   : > { %816 = vmatpush1.bf16.xpose.msra.mxu1 %v815_v32 }
  0xc1   : > { %880 = vmatpush1.bf16.xpose.msra.mxu0 %v879_v33  ;;  %818 = vmatprep.subr.bf16.mxu1 %v817_v34 }
  0xc2   : > { %882 = vmatprep.subr.bf16.mxu0 %v881_v35 }
  0xc8   : > { %820 = vmatpush1.bf16.xpose.msra.mxu1 %v819_v44 }
  0xc9   : > { %884 = vmatpush1.bf16.xpose.msra.mxu0 %v883_v45  ;;  %822 = vmatprep.subr.bf16.mxu1 %v821_v46 }
  0xca   : > { %886 = vmatprep.subr.bf16.mxu0 %v885_v47 }
  0xd0   : > { %824 = vmatpush1.bf16.xpose.msra.mxu1 %v823_v56 }
  0xd1   : > { %888 = vmatpush1.bf16.xpose.msra.mxu0 %v887_v57  ;;  %826 = vmatprep.subr.bf16.mxu1 %v825_v58 }
  0xd2   : > { %890 = vmatprep.subr.bf16.mxu0 %v889_v59 }
  0xd8   : > { %828 = vmatpush1.bf16.xpose.msra.mxu1 %v827_v0 }
  0xd9   : > { %892 = vmatpush1.bf16.xpose.msra.mxu0 %v891_v1 }
  0xdf   : > { %481 = vmatmul.mubr.f32.vlgmr.msra.gmra.mrb[0].mxu1 %v280_v2 }
  0xe0   : > { %558 = vmatmul.mubr.f32.vlgmr.msra.gmra.mrb[0].mxu0 %v282_v3  ;;  %486 = vmatprep.mubr.f32.mxu1 %v285_v4 }
  0xe1   : > { %563 = vmatprep.mubr.f32.mxu0 %v287_v5 }
  0xe3   : > { %487 = vmatmul.mubr.f32.gmra.mrb[2].mxu1 %v284_v6 }
  0xe4   : > { %564 = vmatmul.mubr.f32.gmra.mrb[2].mxu0 %v286_v7 }
 0x1b2   : > { %v482_v14 = vpop.f32.mrb[0].mxu1 }
 0x1b3   : > { %v559_v15 = vpop.f32.mrb[0].mxu0  ;;  %v484_v16 = vpop.f32.mrb[1].mxu1 }
 0x1b4   : > { %v560_v17 = vadd.f32 %v559_v15, %v482_v14  ;;  %v561_v19 = vpop.f32.mrb[1].mxu0 }
 0x1b5   : > { %v562_v20 = vadd.f32 %v561_v19, %v484_v16 }
 0x1b6   : > { %v585_v22 = vmul.f32 0.00044194172, %v560_v17  ;;  %v488_v23 = vpop.f32.mrb[2].mxu1 }
 0x1b7   : > { %v586_v24 = vmul.f32 0.00044194172, %v562_v20  ;;  %v565_v25 = vpop.f32.mrb[2].mxu0  ;;  %v490_v26 = vpop.f32.mrb[3].mxu1 }
 0x1b8   : > { %v602_v27 = vadd.f32 %v595_v18, %v585_v22  ;;  %v566_v28 = vadd.f32 %v565_v25, %v488_v23  ;;  %v567_v29 = vpop.f32.mrb[3].mxu0 }
 0x1b9   : > { %v603_v30 = vadd.f32 %v599_v21, %v586_v24  ;;  %v568_v31 = vadd.f32 %v567_v29, %v490_v26 }
 0x1ba   : > { %606 = vst [vmem:[%s256_s9] sm:$0xff] %v602_v27  ;;  %v587_v32 = vmul.f32 0.00044194172, %v566_v28 }
 0x1bb   : > { %607 = vst [vmem:[%s256_s9 + $0x8] sm:$0xff] %v603_v30  ;;  %v588_v33 = vmul.f32 0.00044194172, %v568_v31 }
 0x1bc   : > { %v604_v34 = vadd.f32 %v595_v18, %v587_v32 }
 0x1bd   : > { %v605_v35 = vadd.f32 %v599_v21, %v588_v33 }
 0x1be   : > { %608 = vst [vmem:[%s256_s9 + $0x10] sm:$0xff] %v604_v34 }
 0x1bf   : > { %609 = vst [vmem:[%s256_s9 + $0x18] sm:$0xff] %v605_v35 }
 0x1c0   : > { %1046 = shalt.err (!%p1043_p9)
}
 0x1c1   : > { %s1047_s7 = scalar_lea.hbm %s1460_s21, 512  ;;  %s1051_s24 = scalar_lea.hbm %s1512_s3, 1024 }
 0x1c2   : > { %p1048_p1 = scmp.ne.s32.totalorder %s1460_s21, %s1047_s7  ;;  %p1052_p7 = scmp.lt.u32.totalorder %s1460_s21, %s1512_s3 }
 0x1c3   : > { %p1053_p13 = scmp.lt.u32.totalorder %s1051_s24, %s1047_s7  ;;  %p1055_p6 = scmp.lt.u32.totalorder %s1047_s7, %s1460_s21 }
 0x1c4   : > { %p1049_p2 = pnand %p1048_p1, %p1248_p10 }
 0x1c5   : > { %p1054_p4 = por %p1053_p13, %p1052_p7 }
 0x1c6   : > { %p1050_p3 = pneg %p1049_p2 }
 0x1c7   : > { %p1056_p8 = por %p1055_p6, %p1054_p4 }
 0x1c9   : > { %p1057_p12 = pnand %p1056_p8, %p1050_p3 }
 0x1cb   : > { %1060 = shalt.err (!%p1057_p12)
}
 0x1cc   : > { %s1126_s9 = smov 256   ;;  %s1127_s25 = smov 512  }
 0x1cd   : > { %s1128_s8 = smov 16  }
 0x1ce   : > { %903 = dma.vmem_to_hbm [thread:$0]  (%p1248_p10), %s1455_s18, 512, %s1460_s21, %s611_s4, %s1126_s9, %s1127_s25, %s1128_s8  }
 0x1cf PF: > { %s642_s26 = sand.u32 1, %s1099_s12   ;;  %p1530_p11 = scmp.ne.s32.totalorder %s1520_s23, 0 }
 0x1d0   : > { %p1531_p0 = scmp.ge.s32.totalorder %s1119_s17, 2  ;;  %s643_s15 = scalar_lea.sflag [#allocation5], %s642_s26 }
 0x1d2   : > { %p914_p5 = pnand %p1531_p0, %p1530_p11 }
 0x1d4   : > { %1094 = dma.done.wait (!%p914_p5), %s643_s15, 512  }
 0x1d5   : > { %1096 = vsyncadd (!%p914_p5), %s643_s15, 4294966784  ;;  %s20_s17 = sadd.s32 1, %s1119_s17   ;;  %s1532_s12 = smov %s1103_s13 }
 0x1d6   : > { %p17_p9 = scmp.ge.s32.totalorder %s20_s17, 4   ;;  %s1533_s13 = smov %s1107_s14 }
 0x1d7   : > { %s1534_s14 = smov %s1257_s5  ;;  %s1535_s15 = smov %s1115_s16 }
 0x1d8   : > { %s1536_s16 = smov %s1538_s28  ;;  %19 = sbr.rel (!%p17_p9) target bundleno = 7 (0x7), region = 94 }
 0x1df   :  { %648 = vsyncpa [#allocation4], 1 }
 0x1e0   :  { %650 = vsyncpa [#allocation4 + $0x1], 1 }
 0x1e1   :  { %651 = vsyncpa [#allocation7], 1 }
 0x1e2   :  { %653 = vsyncpa [#allocation7 + $0x1], 1 }
 0x1e3   :  { %654 = vsyncpa [#allocation5], 1 }
 0x1e4   :  { %656 = vsyncpa [#allocation5 + $0x1], 1 }

</bundles_post_ra>
